<compile_context>
chip_gen: v7x
topology: tpu7x:2x2x1
jax: 0.10.0
libtpu: 0.0.40
codegen_flags: <defaults>
</compile_context>

<pallas_src>
import functools

import jax
import jax.numpy as jnp
import numpy as np
from jax import lax
from jax.experimental import pallas as pl
from jax.experimental.pallas import tpu as pltpu

EPS = 1e-5  # torch.nn.InstanceNorm2d default eps


def _round_up(x, m):
    return ((x + m - 1) // m) * m


def convblock_kernel(patches_ref, w_ref, out_ref, *, p_valid, tile_p):
    # patches_ref: (1, K_pad, TP)  w_ref: (C_out, K_pad)  out_ref: (1, C_out, P_pad)
    pt = pl.program_id(1)

    # Conv as matmul on the MXU: (C_out, K_pad) @ (K_pad, TP) -> (C_out, TP).
    conv = jnp.dot(w_ref[...], patches_ref[0],
                   preferred_element_type=jnp.float32)

    # Write this spatial tile into the VMEM-resident per-image output block.
    col0 = pl.multiple_of(pt * tile_p, 128)
    out_ref[0, :, pl.ds(col0, tile_p)] = conv.astype(out_ref.dtype)

    # Last spatial tile: the full (C_out, P_pad) conv result is in VMEM.
    # Compute per-channel InstanceNorm stats over the lane axis, normalize,
    # ReLU, and store.  Padded columns hold 0 (zero patches, no bias), so the
    # sums are unaffected; divide by the true spatial count p_valid.
    @pl.when(pt == pl.num_programs(1) - 1)
    def _():
        full = out_ref[0].astype(jnp.float32)                     # (C_out, P_pad)
        inv_p = 1.0 / p_valid
        mean = jnp.sum(full, axis=-1, keepdims=True) * inv_p
        centered = full - mean
        lane = lax.broadcasted_iota(jnp.int32, full.shape, 1)
        sq = jnp.where(lane < p_valid, centered * centered, 0.0)  # mask padded cols
        var = jnp.sum(sq, axis=-1, keepdims=True) * inv_p         # biased variance
        normed = centered * lax.rsqrt(var + EPS)
        out_ref[0] = jnp.maximum(normed, 0.0).astype(out_ref.dtype)


def _im2col_kp(x, kernel_size, stride, padding):
    """x: (N, C, H, W) -> patches (N, C*kH*kW, H_out*W_out).

    Feature order (c, dy, dx) matches weight.reshape(C_out, C_in*kH*kW)."""
    N, C, H, W = x.shape
    kH = kW = kernel_size
    pH, pW = padding
    H_out = (H + 2 * pH - kH) // stride + 1
    W_out = (W + 2 * pW - kW) // stride + 1
    xp = jnp.pad(x, ((0, 0), (0, 0), (pH, pH), (pW, pW)))
    taps = []
    for dy in range(kH):
        for dx in range(kW):
            taps.append(
                xp[:, :, dy:dy + stride * (H_out - 1) + 1:stride,
                          dx:dx + stride * (W_out - 1) + 1:stride])
    pat = jnp.stack(taps, axis=2)                       # (N, C, kH*kW, H_out, W_out)
    pat = pat.reshape(N, C * kH * kW, H_out * W_out)    # (N, K, P)
    return pat, H_out, W_out


@functools.partial(
    jax.jit,
    static_argnames=("kernel_size", "stride", "padding", "matmul_dtype"))
def conv_block(x, weight, bias, *, kernel_size=3, stride=2, padding=(1, 1),
               matmul_dtype=jnp.float32):
    """x: (N, C_in, H, W) NCHW. weight: (C_out, C_in, kH, kW). bias: (C_out,).
    Returns NCHW output of Conv2d -> InstanceNorm2d -> ReLU."""
    del bias  # cancels exactly under InstanceNorm2d(affine=False)

    N, C_in, H, W = x.shape
    C_out = weight.shape[0]
    K = C_in * kernel_size * kernel_size

    patches, H_out, W_out = _im2col_kp(x, kernel_size, stride, padding)
    P = H_out * W_out

    # MXU / (8,128)-friendly padding and bounded spatial tiles.
    K_pad = _round_up(K, 128)
    p128 = _round_up(P, 128)
    TP = p128 if p128 <= 512 else 512        # <=512 lanes per tile keeps VMEM bounded
    P_pad = _round_up(P, TP)
    num_pt = P_pad // TP

    patches = jnp.pad(patches, ((0, 0), (0, K_pad - K), (0, P_pad - P)))
    patches = patches.astype(matmul_dtype)
    w2d = jnp.pad(weight.reshape(C_out, K), ((0, 0), (0, K_pad - K)))
    w2d = w2d.astype(matmul_dtype)

    kernel = functools.partial(convblock_kernel, p_valid=int(P), tile_p=TP)

    out = pl.pallas_call(
        kernel,
        out_shape=jax.ShapeDtypeStruct((N, C_out, P_pad), jnp.float32),
        grid_spec=pl.GridSpec(
            grid=(N, num_pt),
            in_specs=[
                pl.BlockSpec((1, K_pad, TP), lambda n, pt: (n, 0, pt)),
                pl.BlockSpec((C_out, K_pad), lambda n, pt: (0, 0)),
            ],
            out_specs=pl.BlockSpec((1, C_out, P_pad), lambda n, pt: (n, 0, 0)),
        ),
        compiler_params=pltpu.CompilerParams(
            dimension_semantics=("parallel", "arbitrary")),
    )(patches, w2d)

    if P_pad != P:
        out = out[:, :, :P]
    # Already NCHW: (N, C_out, P) -> (N, C_out, H_out, W_out) is a free reshape.
    return out.reshape(N, C_out, H_out, W_out)


def _reference(x, weight, bias, *, stride=2, padding=(1, 1)):
    """Pure-JAX reference of the PyTorch forward (for validation)."""
    conv = lax.conv_general_dilated(
        x, weight, window_strides=(stride, stride),
        padding=[(padding[0], padding[0]), (padding[1], padding[1])],
        dimension_numbers=("NCHW", "OIHW", "NCHW"),
    ) + bias.reshape(1, -1, 1, 1)
    mean = jnp.mean(conv, axis=(2, 3), keepdims=True)
    var = jnp.mean((conv - mean) ** 2, axis=(2, 3), keepdims=True)
    norm = (conv - mean) / jnp.sqrt(var + EPS)
    return jnp.maximum(norm, 0.0)


if __name__ == "__main__":
    # Small deterministic shapes: ConvBlock(input_size=4, output_size=8)
    N, C_in, H, W = 2, 4, 16, 16
    C_out, ksize, stride, padding = 8, 3, 2, (1, 1)

    key = jax.random.PRNGKey(0)
    kx, kw, kb = jax.random.split(key, 3)
    x = jax.random.normal(kx, (N, C_in, H, W), dtype=jnp.float32)
    fan_in = C_in * ksize * ksize
    bound = 1.0 / np.sqrt(fan_in)
    weight = jax.random.uniform(kw, (C_out, C_in, ksize, ksize),
                                minval=-bound, maxval=bound, dtype=jnp.float32)
    bias = jax.random.uniform(kb, (C_out,), minval=-bound, maxval=bound,
                              dtype=jnp.float32)

    out = conv_block(x, weight, bias, kernel_size=ksize, stride=stride,
                     padding=padding)
    out = jax.block_until_ready(out)

    ref = _reference(x, weight, bias, stride=stride, padding=padding)
    np.testing.assert_allclose(np.asarray(out), np.asarray(ref),
                               rtol=1e-4, atol=1e-4)
    print("KERNEL_OK")
</pallas_src>

<mosaic_0001>
module attributes {stable_mosaic.version = 11 : i64} {
  func.func @convblock_kernel(%arg0: i32, %arg1: i32, %arg2: memref<1x128x128xf32, #tpu.memory_space<vmem>>, %arg3: memref<8x128xf32, #tpu.memory_space<vmem>>, %arg4: memref<1x8x128xf32, #tpu.memory_space<vmem>>) attributes {dimension_semantics = [#tpu.dimension_semantics<parallel>, #tpu.dimension_semantics<arbitrary>], iteration_bounds = array<i64: 2, 1>, scalar_prefetch = 0 : i64, scratch_operands = 0 : i64, tpu.core_type = #tpu.core_type<tc>, window_params = [{transform_indices = @transform_0, window_bounds = array<i64: 1, 128, 128>}, {pipeline_mode = #tpu.pipeline_mode<synchronous>, transform_indices = @transform_1, window_bounds = array<i64: 8, 128>}, {transform_indices = @transform_2, window_bounds = array<i64: 1, 8, 128>}]} {
    %c0 = arith.constant 0 : index
    %c0_0 = arith.constant 0 : index
    %0 = vector.load %arg3[%c0, %c0_0] : memref<8x128xf32, #tpu.memory_space<vmem>>, vector<8x128xf32>
    %c0_1 = arith.constant 0 : index
    %c0_2 = arith.constant 0 : index
    %c0_3 = arith.constant 0 : index
    %1 = vector.load %arg2[%c0_1, %c0_2, %c0_3] : memref<1x128x128xf32, #tpu.memory_space<vmem>>, vector<1x128x128xf32>
    %2 = vector.shape_cast %1 : vector<1x128x128xf32> to vector<128x128xf32>
    %cst = arith.constant dense<0.000000e+00> : vector<8x128xf32>
    %3 = tpu.matmul %0, %2, %cst {dimension_numbers = #tpu.dot_dimension_numbers<[1], [0], [0], [1], [0, 0, 1, 1], [], []>} : vector<8x128xf32>, vector<128x128xf32>, vector<8x128xf32> -> vector<8x128xf32>
    %c128_i32 = arith.constant 128 : i32
    %4 = arith.muli %arg1, %c128_i32 : i32
    %5 = tpu.assume_multiple %4, 128 : i32
    %c0_4 = arith.constant 0 : index
    %c0_5 = arith.constant 0 : index
    %6 = arith.index_cast %5 : i32 to index
    %7 = vector.load %arg4[%c0_4, %c0_5, %6] : memref<1x8x128xf32, #tpu.memory_space<vmem>>, vector<1x8x128xf32>
    %8 = vector.shape_cast %7 : vector<1x8x128xf32> to vector<8x128xf32>
    %9 = vector.shape_cast %3 : vector<8x128xf32> to vector<1x8x128xf32>
    tpu.vector_store %arg4[%c0_4, %c0_5, %6], %9 {strides = array<i32>} : memref<1x8x128xf32, #tpu.memory_space<vmem>>, vector<1x8x128xf32>,
    %c0_i32 = arith.constant 0 : i32
    %10 = arith.cmpi eq, %arg1, %c0_i32 : i32
    %11 = arith.extui %10 : i1 to i32
    %c0_i32_6 = arith.constant 0 : i32
    %12 = arith.cmpi ne, %11, %c0_i32_6 : i32
    scf.if %12 {
      %c0_7 = arith.constant 0 : index
      %c0_8 = arith.constant 0 : index
      %c0_9 = arith.constant 0 : index
      %13 = vector.load %arg4[%c0_7, %c0_8, %c0_9] : memref<1x8x128xf32, #tpu.memory_space<vmem>>, vector<1x8x128xf32>
      %14 = vector.shape_cast %13 : vector<1x8x128xf32> to vector<8x128xf32>
      %cst_10 = arith.constant dense<0.000000e+00> : vector<8xf32>
      %15 = vector.multi_reduction <add>, %14, %cst_10 [1] : vector<8x128xf32> to vector<8xf32>
      %16 = vector.shape_cast %15 : vector<8xf32> to vector<8x1xf32>
      %cst_11 = arith.constant 1.562500e-02 : f32
      %17 = vector.broadcast %cst_11 : f32 to vector<8x1xf32>
      %18 = arith.mulf %16, %17 : vector<8x1xf32>
      %19 = vector.broadcast %18 : vector<8x1xf32> to vector<8x128xf32>
      %20 = arith.subf %14, %19 : vector<8x128xf32>
      %21 = tpu.iota {dimensions = array<i32: 1>} : vector<8x128xi32>
      %c64_i32 = arith.constant 64 : i32
      %22 = vector.broadcast %c64_i32 : i32 to vector<8x128xi32>
      %23 = arith.cmpi slt, %21, %22 : vector<8x128xi32>
      %24 = arith.mulf %20, %20 : vector<8x128xf32>
      %cst_12 = arith.constant 0.000000e+00 : f32
      %25 = vector.broadcast %cst_12 : f32 to vector<8x128xf32>
      %26 = arith.select %23, %24, %25 : vector<8x128xi1>, vector<8x128xf32>
      %cst_13 = arith.constant dense<0.000000e+00> : vector<8xf32>
      %27 = vector.multi_reduction <add>, %26, %cst_13 [1] : vector<8x128xf32> to vector<8xf32>
      %28 = vector.shape_cast %27 : vector<8xf32> to vector<8x1xf32>
      %cst_14 = arith.constant 1.562500e-02 : f32
      %29 = vector.broadcast %cst_14 : f32 to vector<8x1xf32>
      %30 = arith.mulf %28, %29 : vector<8x1xf32>
      %cst_15 = arith.constant 9.99999974E-6 : f32
      %31 = vector.broadcast %cst_15 : f32 to vector<8x1xf32>
      %32 = arith.addf %30, %31 : vector<8x1xf32>
      %33 = math.rsqrt %32 : vector<8x1xf32>
      %34 = vector.broadcast %33 : vector<8x1xf32> to vector<8x128xf32>
      %35 = arith.mulf %20, %34 : vector<8x128xf32>
      %cst_16 = arith.constant 0.000000e+00 : f32
      %36 = vector.broadcast %cst_16 : f32 to vector<8x128xf32>
      %37 = arith.maximumf %35, %36 : vector<8x128xf32>
      %c0_17 = arith.constant 0 : index
      %c0_18 = arith.constant 0 : index
      %c0_19 = arith.constant 0 : index
      %38 = vector.load %arg4[%c0_17, %c0_18, %c0_19] : memref<1x8x128xf32, #tpu.memory_space<vmem>>, vector<1x8x128xf32>
      %39 = vector.shape_cast %38 : vector<1x8x128xf32> to vector<8x128xf32>
      %40 = vector.shape_cast %37 : vector<8x128xf32> to vector<1x8x128xf32>
      tpu.vector_store %arg4[%c0_17, %c0_18, %c0_19], %40 {strides = array<i32>} : memref<1x8x128xf32, #tpu.memory_space<vmem>>, vector<1x8x128xf32>,
    } else {
    }
    return
  }
  func.func @transform_0(%arg0: i32, %arg1: i32) -> (i32, i32, i32) {
    %c0_i32 = arith.constant 0 : i32
    %c0_i32_0 = arith.constant 0 : i32
    return %arg0, %c0_i32, %arg1 : i32, i32, i32
  }
  func.func @transform_1(%arg0: i32, %arg1: i32) -> (i32, i32) {
    %c0_i32 = arith.constant 0 : i32
    %c0_i32_0 = arith.constant 0 : i32
    %c0_i32_1 = arith.constant 0 : i32
    return %c0_i32, %c0_i32_0 : i32, i32
  }
  func.func @transform_2(%arg0: i32, %arg1: i32) -> (i32, i32, i32) {
    %c0_i32 = arith.constant 0 : i32
    %c0_i32_0 = arith.constant 0 : i32
    %c0_i32_1 = arith.constant 0 : i32
    return %arg0, %c0_i32, %c0_i32_0 : i32, i32, i32
  }
}

</mosaic_0001>

<bundles_post_ra>
// kernel: conv_block.1
= control target key start
LH: loop header
LB: loop body
LE: loop exit
PB: predicated region body
PF: predicated region fallthrough
CT: control target
= control target key end

     0   :  { %s505_s9 = smov 0   ;;  %s507_s10 = smov 0   ;;  %s563_s0 = inlined_call_operand.vmem [shape: f32[2,128,128], index: 0, kind: input, shape index: {}]   ;;  %s564_s1 = inlined_call_operand.vmem [shape: f32[8,128], index: 1, kind: input, shape index: {}]   ;;  %s565_s2 = inlined_call_operand.vmem [shape: f32[2,8,128], index: 2, kind: output, shape index: {}]  }
   0x1   :  { %s509_s11 = smov 0  }
   0x2 LB: > { %s24_s12 = sadd.s32 1, %s481_s10  ;;  %p351_p0 = scmp.ge.s32.totalorder %s485_s11, 1  ;;  %s485_s11 = sphi %s509_s11, %s12_s11   ;;  %s481_s10 = sphi %s507_s10, %s567_s10   ;;  %s477_s9 = sphi %s505_s9, %s566_s9  }
   0x3   : > { %p26_p1 = scmp.ge.s32.totalorder %s24_s12, 2  ;;  %p129_p2 = scmp.lt.s32.totalorder %s485_s11, 3 }
   0x5   : > { %s569_s12 = smov (%p26_p1, %s24_s12), 0  ;;  %p130_p3 = pnand %p351_p0, %p129_p2 }
   0x6   : > { %p153_p4 = scmp.lt.s32.totalorder (!%p130_p3), %s477_s9, 1  ;;  %v487_v0 = vmov (!%p130_p3), 0.0|0.0   ;;  %vm488_vm0 = vmmov (!%p130_p3), 0   ;;  %v489_v1 = vmov (!%p130_p3), 0.0   ;;  %v165_v26 = vld [vmem:[%s564_s1] sm:$0xff] (!%p130_p3)  ;;  %v266_v29 = vlaneseq (!%p130_p3) }
   0x7   : > { %133 = sbr.rel (%p130_p3) target bundleno = 574 (0x23e), region = 28  ;;  %410 = vmatprep.subr.bf16.mxu0 (!%p130_p3), %v487_v0  ;;  %407 = vmatprep.mubr.msk.f32.mxu0 (!%p130_p3), %vm488_vm0, %v489_v1 }
   0x8   : > { %v267_v31 = vand.u32 (!%p130_p3), 127, %v266_v29 }
   0xa   : > { %vm268_vm1 = vcmp.lt.s32.totalorder (!%p130_p3), %v267_v31, 64 }
   0xe   : > { %s571_s9 = smov (!%p153_p4, %s477_s9), 1 }
   0xf   : > { %s357_s13 = sshll.u32 %s571_s9, 7  ;;  %s354_s19 = sshll.u32 %s571_s9, 3 }
  0x10   : > { %s529_s16 = scalar_lea.vmem %s563_s0, %s357_s13  ;;  %s164_s22 = scalar_lea.vmem %s565_s2, %s354_s19 }
  0x11   : > { %v166_v2 = vld [vmem:[%s529_s16] sm:$0xff]  ;;  %v167_v3 = vld [vmem:[%s529_s16 + $0x8] sm:$0xff]  ;;  %v168_v4 = vld [vmem:[%s529_s16 + $0x10] sm:$0xff] }
  0x12   : > { %v411_v5 = vpack.c.bf16 %v167_v3, %v166_v2  ;;  %v169_v6 = vld [vmem:[%s529_s16 + $0x18] sm:$0xff]  ;;  %v170_v8 = vld [vmem:[%s529_s16 + $0x20] sm:$0xff]  ;;  %v171_v9 = vld [vmem:[%s529_s16 + $0x28] sm:$0xff] }
  0x13   : > { %v414_v7 = vpack.c.bf16 %v169_v6, %v168_v4  ;;  %v417_v10 = vpack.c.bf16 %v171_v9, %v170_v8  ;;  %v172_v11 = vld [vmem:[%s529_s16 + $0x30] sm:$0xff]  ;;  %v173_v12 = vld [vmem:[%s529_s16 + $0x38] sm:$0xff]  ;;  %v174_v14 = vld [vmem:[%s529_s16 + $0x40] sm:$0xff] }
  0x14   : > { %412 = vmatpush3.bf16.msra.mxu0 %v411_v5  ;;  %v420_v13 = vpack.c.bf16 %v173_v12, %v172_v11  ;;  %v175_v15 = vld [vmem:[%s529_s16 + $0x48] sm:$0xff]  ;;  %v176_v17 = vld [vmem:[%s529_s16 + $0x50] sm:$0xff]  ;;  %v177_v18 = vld [vmem:[%s529_s16 + $0x58] sm:$0xff] }
  0x15   : > { %413 = vmatprep.subr.bf16.mxu0 %v487_v0  ;;  %v423_v16 = vpack.c.bf16 %v175_v15, %v174_v14  ;;  %v426_v19 = vpack.c.bf16 %v177_v18, %v176_v17  ;;  %v178_v20 = vld [vmem:[%s529_s16 + $0x60] sm:$0xff]  ;;  %v179_v21 = vld [vmem:[%s529_s16 + $0x68] sm:$0xff]  ;;  %v180_v23 = vld [vmem:[%s529_s16 + $0x70] sm:$0xff] }
  0x16   : > { %v429_v22 = vpack.c.bf16 %v179_v21, %v178_v20  ;;  %v181_v24 = vld [vmem:[%s529_s16 + $0x78] sm:$0xff] }
  0x17   : > { %v432_v25 = vpack.c.bf16 %v181_v24, %v180_v23 }
  0x18   : > { %415 = vmatpush3.bf16.msra.mxu0 %v414_v7 }
  0x19   : > { %416 = vmatprep.subr.bf16.mxu0 %v487_v0 }
  0x1c   : > { %418 = vmatpush3.bf16.msra.mxu0 %v417_v10 }
  0x1d   : > { %419 = vmatprep.subr.bf16.mxu0 %v487_v0 }
  0x20   : > { %421 = vmatpush3.bf16.msra.mxu0 %v420_v13 }
  0x21   : > { %422 = vmatprep.subr.bf16.mxu0 %v487_v0 }
  0x24   : > { %424 = vmatpush3.bf16.msra.mxu0 %v423_v16 }
  0x25   : > { %425 = vmatprep.subr.bf16.mxu0 %v487_v0 }
  0x28   : > { %427 = vmatpush3.bf16.msra.mxu0 %v426_v19 }
  0x29   : > { %428 = vmatprep.subr.bf16.mxu0 %v487_v0 }
  0x2c   : > { %430 = vmatpush3.bf16.msra.mxu0 %v429_v22 }
  0x2d   : > { %431 = vmatprep.subr.bf16.mxu0 %v487_v0 }
  0x30   : > { %433 = vmatpush3.bf16.msra.mxu0 %v432_v25 }
  0x33   : > { %408 = vmatmul.mubr.f32.vlgmr.msra.gmra.mrb[0].mxu0 %v165_v26 }
 0x106   : > { %v248_v27 = vpop.f32.mrb[0].mxu0 }
 0x107   : > { %v409_v28 = vpop.f32.mrb[1].mxu0  ;;  %262 = vadd.xlane.f32.xlu0 %v248_v27 }
 0x194   : > { %v263_v30 = vpop.xlane.xlu0 %262 }
 0x195   : > { %v264_v32 = vmul.f32 0.015625, %v263_v30 }
 0x197   : > { %v265_v33 = vsub.f32 %v248_v27, %v264_v32 }
 0x199   : > { %v269_v34 = vmul.f32 %v265_v33, %v265_v33 }
 0x19b   : > { %v270_v35 = vsel %vm268_vm1, %v269_v34, 0.0 }
 0x19c   : > { %271 = vadd.xlane.f32.xlu0 %v270_v35 }
 0x229   : > { %v272_v36 = vpop.xlane.xlu0 %271 }
 0x22a   : > { %v273_v37 = vmul.f32 0.015625, %v272_v36 }
 0x22c   : > { %v274_v38 = vadd.f32 1e-05, %v273_v37 }
 0x22e   : > { %461 = vrsqrt.f32 %v274_v38 }
 0x238   : > { %v462_v39 = vpop.eup %461 }
 0x239   : > { %v276_v40 = vmul.f32 %v462_v39, %v265_v33 }
 0x23b   : > { %v277_v41 = vmax.f32 %v276_v40, 0.0 }
 0x23d   : > { %278 = vst [vmem:[%s164_s22] sm:$0xff] %v277_v41 }
 0x23e PF: > { %s12_s11 = sadd.s32 1, %s485_s11   ;;  %s566_s9 = smov %s481_s10 }
 0x23f   : > { %p9_p5 = scmp.ge.s32.totalorder %s12_s11, 4   ;;  %s567_s10 = smov %s569_s12 }
 0x241   :  { %11 = sbr.rel (!%p9_p5) target bundleno = 2 (0x2), region = 63 }

</bundles_post_ra>
